<compile_context>
chip_gen: v7x
topology: tpu7x:2x2x1
jax: 0.10.0
libtpu: 0.0.40
codegen_flags: <defaults>
</compile_context>

<pallas_src>
import jax
import jax.numpy as jnp
from jax.experimental import pallas as pl
from jax.experimental.pallas import tpu as pltpu


# ----------------------------- Fused Pallas kernel ---------------------------

def _fused_cl_kernel(
    x_ref, emb_ref, pemb_ref,
    fa_w1x_ref, fa_w1e_ref, fa_b1_ref, fa_w2_ref, fa_b2_ref,
    rn_w1e_ref, rn_w1p_ref, rn_b1_ref, rn_w2_ref, rn_b2_ref,
    adapted_ref, loss_ref):
    """Fused feature_adapter + regularization_network.

    adapted = relu(x @ W1x + emb @ W1e + b1) @ W2 + b2          (lane-padded)
    loss    = mean(1 - sigmoid( relu(emb @ R1e + pemb @ R1p + rb1) . r2 + rb2 ))
    """
    x = x_ref[...]
    emb = emb_ref[...]

    # ---- feature adapter (concat folded into two MXU pushes) ----
    h = jnp.dot(x, fa_w1x_ref[...], preferred_element_type=jnp.float32)
    h = h + jnp.dot(emb, fa_w1e_ref[...], preferred_element_type=jnp.float32)
    h = h + fa_b1_ref[...]
    h = jnp.maximum(h, 0.0)
    adapted_ref[...] = (
        jnp.dot(h, fa_w2_ref[...], preferred_element_type=jnp.float32)
        + fa_b2_ref[...]).astype(adapted_ref.dtype)

    # ---- regularization network ----
    pemb = pemb_ref[...]
    h2 = jnp.dot(emb, rn_w1e_ref[...], preferred_element_type=jnp.float32)
    h2 = h2 + jnp.dot(pemb, rn_w1p_ref[...], preferred_element_type=jnp.float32)
    h2 = h2 + rn_b1_ref[...]
    h2 = jnp.maximum(h2, 0.0)
    # Output layer has N=1: use VPU multiply + lane reduce instead of the MXU.
    logits = jnp.sum(h2 * rn_w2_ref[...], axis=-1, keepdims=True) + rn_b2_ref[0]
    sim = jax.nn.sigmoid(logits)                       # (B, 1)
    loss_ref[0] = jnp.mean(1.0 - sim)                  # scalar -> SMEM


# ----------------------------- Wrapper ---------------------------------------

def fused_forward_pallas(x, emb, pemb, pp):
    """Single pallas_call: returns (lane-padded adapted features, scalar loss)."""
    B = x.shape[0]
    Dp = pp["fa_w2"].shape[1]
    vmem = pl.BlockSpec(memory_space=pltpu.MemorySpace.VMEM)
    smem = pl.BlockSpec(memory_space=pltpu.MemorySpace.SMEM)
    adapted_pad, loss = pl.pallas_call(
        _fused_cl_kernel,
        out_shape=(jax.ShapeDtypeStruct((B, Dp), jnp.float32),
                   jax.ShapeDtypeStruct((1,), jnp.float32)),
        in_specs=[vmem, vmem, vmem,                     # x, emb, pemb
                  vmem, vmem, vmem, vmem, vmem,         # feature-adapter params
                  vmem, vmem, vmem, vmem, smem],        # reg-net params (+SMEM bias)
        out_specs=(vmem, smem),
    )(x, emb, pemb,
      pp["fa_w1x"], pp["fa_w1e"], pp["fa_b1"], pp["fa_w2"], pp["fa_b2"],
      pp["rn_w1e"], pp["rn_w1p"], pp["rn_b1"], pp["rn_w2_row"], pp["rn_b2"])
    return adapted_pad, loss[0]


# ----------------------------- Module / params --------------------------------

class ContinualLearningConfig:
    def __init__(self, max_tasks=10, task_dim=16, input_dim=32,
                 hidden_dim=64, output_dim=32):
        self.max_tasks = max_tasks
        self.task_dim = task_dim
        self.input_dim = input_dim
        self.hidden_dim = hidden_dim
        self.output_dim = output_dim


def init_params(key, config):
    """Deterministic parameter init (shapes mirror the PyTorch module)."""
    ks = jax.random.split(key, 13)
    c = config

    def lin(kw, kb, fan_in, fan_out):
        # PyTorch nn.Linear default: U(-1/sqrt(fan_in), 1/sqrt(fan_in))
        bound = 1.0 / jnp.sqrt(fan_in)
        w = jax.random.uniform(kw, (fan_in, fan_out), jnp.float32, -bound, bound)
        b = jax.random.uniform(kb, (1, fan_out), jnp.float32, -bound, bound)
        return w, b

    params = {}
    # nn.Embedding(max_tasks, task_dim): N(0, 1)
    params["task_embeddings"] = jax.random.normal(
        ks[0], (c.max_tasks, c.task_dim), jnp.float32)

    # feature_adapter: Linear(input_dim+task_dim -> hidden) / Linear(hidden -> input_dim)
    params["fa_w1"], params["fa_b1"] = lin(ks[1], ks[2], c.input_dim + c.task_dim, c.hidden_dim)
    params["fa_w2"], params["fa_b2"] = lin(ks[3], ks[4], c.hidden_dim, c.input_dim)

    # output_adapter (exists in __init__ but unused in forward; kept for fidelity)
    params["oa_w1"], params["oa_b1"] = lin(ks[5], ks[6], c.output_dim + c.task_dim, c.hidden_dim)
    params["oa_w2"], params["oa_b2"] = lin(ks[7], ks[8], c.hidden_dim, c.output_dim)

    # regularization_network: Linear(2*task_dim -> hidden) / Linear(hidden -> 1)
    params["rn_w1"], params["rn_b1"] = lin(ks[9], ks[10], 2 * c.task_dim, c.hidden_dim)
    params["rn_w2"], params["rn_b2"] = lin(ks[11], ks[12], c.hidden_dim, 1)
    return params


def _pad2d(x, rows=None, cols=None):
    r, c = x.shape
    pr = 0 if rows is None else rows - r
    pc = 0 if cols is None else cols - c
    return jnp.pad(x, ((0, pr), (0, pc)))


def prepare_pallas_params(params, config, lane=128):
    """One-time weight layout prep: split the concat matmuls and zero-pad the
    hidden / output feature axes up to a multiple of 128 lanes."""
    c = config
    Hp = ((c.hidden_dim + lane - 1) // lane) * lane
    Dp = ((c.input_dim + lane - 1) // lane) * lane
    Din, T = c.input_dim, c.task_dim
    pp = {
        # feature adapter (first layer split over the concat axis)
        "fa_w1x": _pad2d(params["fa_w1"][:Din], cols=Hp),      # (Din, Hp)
        "fa_w1e": _pad2d(params["fa_w1"][Din:], cols=Hp),      # (T,   Hp)
        "fa_b1":  _pad2d(params["fa_b1"], cols=Hp),            # (1,   Hp)
        "fa_w2":  _pad2d(params["fa_w2"], rows=Hp, cols=Dp),   # (Hp,  Dp)
        "fa_b2":  _pad2d(params["fa_b2"], cols=Dp),            # (1,   Dp)
        # regularization network (first layer split; second layer as a row)
        "rn_w1e": _pad2d(params["rn_w1"][:T], cols=Hp),        # (T, Hp)
        "rn_w1p": _pad2d(params["rn_w1"][T:], cols=Hp),        # (T, Hp)
        "rn_b1":  _pad2d(params["rn_b1"], cols=Hp),            # (1, Hp)
        "rn_w2_row": _pad2d(params["rn_w2"].T, cols=Hp),       # (1, Hp)
        "rn_b2":  params["rn_b2"].reshape((1,)),               # (1,) scalar in SMEM
    }
    return pp


def continual_learning_forward(params, pallas_params, config,
                               input_features, task_id, previous_task_id=None):
    """Mirrors ContinualLearningModule.forward."""
    emb_table = params["task_embeddings"]
    task_embedding = jnp.take(emb_table, task_id, axis=0)          # (B, task_dim)

    if previous_task_id is not None:
        prev_task_embedding = jnp.take(emb_table, previous_task_id, axis=0)
        adapted_pad, regularization_loss = fused_forward_pallas(
            input_features, task_embedding, prev_task_embedding, pallas_params)
    else:
        # Reuse the fused kernel with a dummy prev-embedding; the (negligible)
        # reg-net work is discarded and the loss is 0, matching the spec.
        adapted_pad, _ = fused_forward_pallas(
            input_features, task_embedding, task_embedding, pallas_params)
        regularization_loss = jnp.float32(0.0)

    adapted_features = adapted_pad[:, :config.input_dim]   # drop lane padding
    return adapted_features, task_embedding, regularization_loss


# ----------------------------- Reference (pure JAX) ---------------------------

def _ref_forward(params, x, task_id, prev_task_id):
    emb = jnp.take(params["task_embeddings"], task_id, axis=0)
    h = jnp.maximum(jnp.concatenate([x, emb], -1) @ params["fa_w1"] + params["fa_b1"], 0.0)
    adapted = h @ params["fa_w2"] + params["fa_b2"]
    pemb = jnp.take(params["task_embeddings"], prev_task_id, axis=0)
    z = jnp.concatenate([emb, pemb], -1)
    h2 = jnp.maximum(z @ params["rn_w1"] + params["rn_b1"], 0.0)
    sim = jax.nn.sigmoid(h2 @ params["rn_w2"] + params["rn_b2"])
    return adapted, emb, jnp.mean(1.0 - sim)


# ----------------------------- Main -------------------------------------------

if __name__ == "__main__":
    config = ContinualLearningConfig(
        max_tasks=10, task_dim=16, input_dim=32, hidden_dim=64, output_dim=32)

    key = jax.random.PRNGKey(0)
    kp, kx, kt, kpt = jax.random.split(key, 4)

    params = init_params(kp, config)
    pparams = prepare_pallas_params(params, config)

    B = 8
    input_features = jax.random.normal(kx, (B, config.input_dim), jnp.float32)
    task_id = jax.random.randint(kt, (B,), 0, config.max_tasks, jnp.int32)
    previous_task_id = jax.random.randint(kpt, (B,), 0, config.max_tasks, jnp.int32)

    fwd = jax.jit(lambda x, tid, ptid: continual_learning_forward(
        params, pparams, config, x, tid, ptid))
    adapted, task_emb, reg_loss = fwd(input_features, task_id, previous_task_id)
    jax.block_until_ready((adapted, task_emb, reg_loss))

    # correctness check against pure-JAX reference
    a_ref, e_ref, l_ref = _ref_forward(params, input_features, task_id, previous_task_id)
    assert adapted.shape == (B, config.input_dim)
    assert task_emb.shape == (B, config.task_dim)
    assert jnp.allclose(adapted, a_ref, atol=1e-5, rtol=1e-5)
    assert jnp.allclose(task_emb, e_ref)
    assert jnp.allclose(reg_loss, l_ref, atol=1e-5, rtol=1e-5)

    # previous_task_id=None path
    a2, e2, l2 = continual_learning_forward(
        params, pparams, config, input_features, task_id, None)
    jax.block_until_ready((a2, e2, l2))
    assert jnp.allclose(a2, a_ref, atol=1e-5, rtol=1e-5)
    assert float(l2) == 0.0

    print("KERNEL_OK")
</pallas_src>

<mosaic_0001>
module attributes {stable_mosaic.version = 11 : i64} {
  func.func @_fused_cl_kernel(%arg0: memref<8x32xf32, #tpu.memory_space<vmem>>, %arg1: memref<8x16xf32, #tpu.memory_space<vmem>>, %arg2: memref<8x16xf32, #tpu.memory_space<vmem>>, %arg3: memref<32x128xf32, #tpu.memory_space<vmem>>, %arg4: memref<16x128xf32, #tpu.memory_space<vmem>>, %arg5: memref<1x128xf32, #tpu.memory_space<vmem>>, %arg6: memref<128x128xf32, #tpu.memory_space<vmem>>, %arg7: memref<1x128xf32, #tpu.memory_space<vmem>>, %arg8: memref<16x128xf32, #tpu.memory_space<vmem>>, %arg9: memref<16x128xf32, #tpu.memory_space<vmem>>, %arg10: memref<1x128xf32, #tpu.memory_space<vmem>>, %arg11: memref<1x128xf32, #tpu.memory_space<vmem>>, %arg12: memref<1xf32, #tpu.memory_space<smem>>, %arg13: memref<8x128xf32, #tpu.memory_space<vmem>>, %arg14: memref<1xf32, #tpu.memory_space<smem>>) attributes {dimension_semantics = [], scalar_prefetch = 0 : i64, scratch_operands = 0 : i64, tpu.core_type = #tpu.core_type<tc>} {
    %c0 = arith.constant 0 : index
    %c0_0 = arith.constant 0 : index
    %0 = vector.load %arg0[%c0, %c0_0] : memref<8x32xf32, #tpu.memory_space<vmem>>, vector<8x32xf32>
    %c0_1 = arith.constant 0 : index
    %c0_2 = arith.constant 0 : index
    %1 = vector.load %arg1[%c0_1, %c0_2] : memref<8x16xf32, #tpu.memory_space<vmem>>, vector<8x16xf32>
    %c0_3 = arith.constant 0 : index
    %c0_4 = arith.constant 0 : index
    %2 = vector.load %arg3[%c0_3, %c0_4] : memref<32x128xf32, #tpu.memory_space<vmem>>, vector<32x128xf32>
    %cst = arith.constant dense<0.000000e+00> : vector<8x128xf32>
    %3 = tpu.matmul %0, %2, %cst {dimension_numbers = #tpu.dot_dimension_numbers<[1], [0], [0], [1], [0, 0, 1, 1], [], []>} : vector<8x32xf32>, vector<32x128xf32>, vector<8x128xf32> -> vector<8x128xf32>
    %c0_5 = arith.constant 0 : index
    %c0_6 = arith.constant 0 : index
    %4 = vector.load %arg4[%c0_5, %c0_6] : memref<16x128xf32, #tpu.memory_space<vmem>>, vector<16x128xf32>
    %cst_7 = arith.constant dense<0.000000e+00> : vector<8x128xf32>
    %5 = tpu.matmul %1, %4, %cst_7 {dimension_numbers = #tpu.dot_dimension_numbers<[1], [0], [0], [1], [0, 0, 1, 1], [], []>} : vector<8x16xf32>, vector<16x128xf32>, vector<8x128xf32> -> vector<8x128xf32>
    %6 = arith.addf %3, %5 : vector<8x128xf32>
    %c0_8 = arith.constant 0 : index
    %c0_9 = arith.constant 0 : index
    %7 = vector.load %arg5[%c0_8, %c0_9] : memref<1x128xf32, #tpu.memory_space<vmem>>, vector<1x128xf32>
    %8 = vector.broadcast %7 : vector<1x128xf32> to vector<8x128xf32>
    %9 = arith.addf %6, %8 : vector<8x128xf32>
    %cst_10 = arith.constant 0.000000e+00 : f32
    %10 = vector.broadcast %cst_10 : f32 to vector<8x128xf32>
    %11 = arith.maximumf %9, %10 : vector<8x128xf32>
    %c0_11 = arith.constant 0 : index
    %c0_12 = arith.constant 0 : index
    %12 = vector.load %arg6[%c0_11, %c0_12] : memref<128x128xf32, #tpu.memory_space<vmem>>, vector<128x128xf32>
    %cst_13 = arith.constant dense<0.000000e+00> : vector<8x128xf32>
    %13 = tpu.matmul %11, %12, %cst_13 {dimension_numbers = #tpu.dot_dimension_numbers<[1], [0], [0], [1], [0, 0, 1, 1], [], []>} : vector<8x128xf32>, vector<128x128xf32>, vector<8x128xf32> -> vector<8x128xf32>
    %c0_14 = arith.constant 0 : index
    %c0_15 = arith.constant 0 : index
    %14 = vector.load %arg7[%c0_14, %c0_15] : memref<1x128xf32, #tpu.memory_space<vmem>>, vector<1x128xf32>
    %15 = vector.broadcast %14 : vector<1x128xf32> to vector<8x128xf32>
    %16 = arith.addf %13, %15 : vector<8x128xf32>
    %c0_16 = arith.constant 0 : index
    %c0_17 = arith.constant 0 : index
    %17 = vector.load %arg13[%c0_16, %c0_17] : memref<8x128xf32, #tpu.memory_space<vmem>>, vector<8x128xf32>
    tpu.vector_store %arg13[%c0_16, %c0_17], %16 {strides = array<i32>} : memref<8x128xf32, #tpu.memory_space<vmem>>, vector<8x128xf32>,
    %c0_18 = arith.constant 0 : index
    %c0_19 = arith.constant 0 : index
    %18 = vector.load %arg2[%c0_18, %c0_19] : memref<8x16xf32, #tpu.memory_space<vmem>>, vector<8x16xf32>
    %c0_20 = arith.constant 0 : index
    %c0_21 = arith.constant 0 : index
    %19 = vector.load %arg8[%c0_20, %c0_21] : memref<16x128xf32, #tpu.memory_space<vmem>>, vector<16x128xf32>
    %cst_22 = arith.constant dense<0.000000e+00> : vector<8x128xf32>
    %20 = tpu.matmul %1, %19, %cst_22 {dimension_numbers = #tpu.dot_dimension_numbers<[1], [0], [0], [1], [0, 0, 1, 1], [], []>} : vector<8x16xf32>, vector<16x128xf32>, vector<8x128xf32> -> vector<8x128xf32>
    %c0_23 = arith.constant 0 : index
    %c0_24 = arith.constant 0 : index
    %21 = vector.load %arg9[%c0_23, %c0_24] : memref<16x128xf32, #tpu.memory_space<vmem>>, vector<16x128xf32>
    %cst_25 = arith.constant dense<0.000000e+00> : vector<8x128xf32>
    %22 = tpu.matmul %18, %21, %cst_25 {dimension_numbers = #tpu.dot_dimension_numbers<[1], [0], [0], [1], [0, 0, 1, 1], [], []>} : vector<8x16xf32>, vector<16x128xf32>, vector<8x128xf32> -> vector<8x128xf32>
    %23 = arith.addf %20, %22 : vector<8x128xf32>
    %c0_26 = arith.constant 0 : index
    %c0_27 = arith.constant 0 : index
    %24 = vector.load %arg10[%c0_26, %c0_27] : memref<1x128xf32, #tpu.memory_space<vmem>>, vector<1x128xf32>
    %25 = vector.broadcast %24 : vector<1x128xf32> to vector<8x128xf32>
    %26 = arith.addf %23, %25 : vector<8x128xf32>
    %cst_28 = arith.constant 0.000000e+00 : f32
    %27 = vector.broadcast %cst_28 : f32 to vector<8x128xf32>
    %28 = arith.maximumf %26, %27 : vector<8x128xf32>
    %c0_29 = arith.constant 0 : index
    %c0_30 = arith.constant 0 : index
    %29 = vector.load %arg11[%c0_29, %c0_30] : memref<1x128xf32, #tpu.memory_space<vmem>>, vector<1x128xf32>
    %30 = vector.broadcast %29 : vector<1x128xf32> to vector<8x128xf32>
    %31 = arith.mulf %28, %30 : vector<8x128xf32>
    %cst_31 = arith.constant dense<0.000000e+00> : vector<8xf32>
    %32 = vector.multi_reduction <add>, %31, %cst_31 [1] : vector<8x128xf32> to vector<8xf32>
    %33 = vector.shape_cast %32 : vector<8xf32> to vector<8x1xf32>
    %c0_32 = arith.constant 0 : index
    %34 = memref.load %arg12[%c0_32] : memref<1xf32, #tpu.memory_space<smem>>
    %35 = vector.broadcast %34 : f32 to vector<8x1xf32>
    %36 = arith.addf %33, %35 : vector<8x1xf32>
    %37 = arith.negf %36 : vector<8x1xf32>
    %38 = math.exp %37 : vector<8x1xf32>
    %cst_33 = arith.constant 1.000000e+00 : f32
    %39 = vector.broadcast %cst_33 : f32 to vector<8x1xf32>
    %40 = arith.addf %39, %38 : vector<8x1xf32>
    %41 = arith.divf %39, %40 : vector<8x1xf32>
    %cst_34 = arith.constant 1.000000e+00 : f32
    %42 = vector.broadcast %cst_34 : f32 to vector<8x1xf32>
    %43 = arith.subf %42, %41 : vector<8x1xf32>
    %44 = vector.shape_cast %43 : vector<8x1xf32> to vector<1x8x1xf32>
    %cst_35 = arith.constant dense<0.000000e+00> : vector<1xf32>
    %45 = vector.multi_reduction <add>, %44, %cst_35 [1, 2] : vector<1x8x1xf32> to vector<1xf32>
    %46 = vector.shape_cast %45 : vector<1xf32> to vector<1x1x1xf32>
    %47 = vector.extract %46[0, 0, 0] : f32 from vector<1x1x1xf32>
    %cst_36 = arith.constant 8.000000e+00 : f32
    %48 = arith.divf %47, %cst_36 : f32
    %c0_37 = arith.constant 0 : index
    %49 = memref.load %arg14[%c0_37] : memref<1xf32, #tpu.memory_space<smem>>
    memref.store %48, %arg14[%c0_37] : memref<1xf32, #tpu.memory_space<smem>>
    return
  }
}

</mosaic_0001>

<bundles_post_ra>
// kernel: _lambda_.1
= control target key start
LH: loop header
LB: loop body
LE: loop exit
PB: predicated region body
PF: predicated region fallthrough
CT: control target
= control target key end

     0   :  { %21 = vsyncpa [#allocation4], 0  ;;  %v721_v2 = vmov 0.0|0.0   ;;  %vm722_vm0 = vmmov 0   ;;  %v723_v4 = vmov 0.0   ;;  %vm57_vm1 = vcmask 130048   ;;  %s948_s0 = inlined_call_operand.vmem [shape: f32[8,32], index: 0, kind: input, shape index: {}]   ;;  %s949_s1 = inlined_call_operand.vmem [shape: f32[8,16], index: 1, kind: input, shape index: {}]   ;;  %s950_s2 = inlined_call_operand.vmem [shape: f32[8,16], index: 2, kind: input, shape index: {}]   ;;  %s951_s3 = inlined_call_operand.vmem [shape: f32[32,128], index: 3, kind: input, shape index: {}]   ;;  %s952_s4 = inlined_call_operand.vmem [shape: f32[16,128], index: 4, kind: input, shape index: {}]   ;;  %s953_s5 = inlined_call_operand.vmem [shape: f32[1,128], index: 5, kind: input, shape index: {}]   ;;  %s954_s6 = inlined_call_operand.vmem [shape: f32[128,128], index: 6, kind: input, shape index: {}]   ;;  %s955_s7 = inlined_call_operand.vmem [shape: f32[1,128], index: 7, kind: input, shape index: {}]   ;;  %s956_s8 = inlined_call_operand.vmem [shape: f32[16,128], index: 8, kind: input, shape index: {}]   ;;  %s957_s9 = inlined_call_operand.vmem [shape: f32[16,128], index: 9, kind: input, shape index: {}]   ;;  %s958_s10 = inlined_call_operand.vmem [shape: f32[1,128], index: 10, kind: input, shape index: {}]   ;;  %s959_s11 = inlined_call_operand.vmem [shape: f32[1,128], index: 11, kind: input, shape index: {}]   ;;  %s960_s12 = inlined_call_operand.<no memory space> [shape: f32[1], index: 12, kind: input, shape index: {}]   ;;  %s961_s13 = inlined_call_operand.hbm [shape: f32[8,128], index: 13, kind: output, shape index: {0}]   ;;  %s962_s14 = inlined_call_operand.hbm [shape: f32[1], index: 14, kind: output, shape index: {1}]  }
   0x1   :  { %v55_v0 = vld [vmem:[%s952_s4] sm:$0xff]  ;;  %v56_v1 = vld [vmem:[%s952_s4 + $0x8] sm:$0xff]  ;;  %635 = vmatprep.subr.bf16.mxu1 %v721_v2  ;;  %572 = vmatprep.mubr.msk.f32.mxu1 %vm722_vm0, %v723_v4  ;;  %v53_v9 = vld [vmem:[%s951_s3 + $0x10] sm:$0xff] }
   0x2   :  { %v636_v3 = vpack.c.bf16 %v56_v1, %v55_v0  ;;  %v51_v5 = vld [vmem:[%s951_s3] sm:$0xff]  ;;  %v52_v6 = vld [vmem:[%s951_s3 + $0x8] sm:$0xff]  ;;  %644 = vmatprep.subr.bf16.mxu0 %v721_v2  ;;  %618 = vmatprep.mubr.msk.f32.mxu0 %vm722_vm0, %v723_v4  ;;  %v54_v10 = vld [vmem:[%s951_s3 + $0x18] sm:$0xff] }
   0x3   :  { %v50_v7 = vld [vmem:[%s949_s1] sm:$0xff]  ;;  %v639_v8 = vpack.c.bf16 %v52_v6, %v51_v5  ;;  %v215_v12 = vld [vmem:[%s954_s6 + $0x8] sm:$0xff]  ;;  %v216_v14 = vld [vmem:[%s954_s6 + $0x10] sm:$0xff]  ;;  %v642_v16 = vpack.c.bf16 %v54_v10, %v53_v9 }
   0x4   :  { %637 = vmatpush3.bf16.msra.mxu1 %v636_v3  ;;  %v214_v11 = vld [vmem:[%s954_s6] sm:$0xff]  ;;  %v217_v15 = vld [vmem:[%s954_s6 + $0x18] sm:$0xff] }
   0x5   :  { %638 = vmatprep.subr.bf16.mxu1 %v721_v2  ;;  %v645_v13 = vpack.c.bf16 %v215_v12, %v214_v11 }
   0x7   :  { %573 = vmatmul.mubr.msk.f32.vlgmr.msra.gmra.mrb[0].mxu1 %vm57_vm1, %v50_v7 }
   0x8   :  { %640 = vmatpush3.bf16.msra.mxu1 %v639_v8  ;;  %583 = vmatprep.mubr.msk.f32.mxu1 %vm722_vm0, %v723_v4 }
   0x9   :  { %22 = vsyncpa [#allocation5], 0  ;;  %641 = vmatprep.subr.bf16.mxu1 %v721_v2  ;;  %v311_v17 = vld [vmem:[%s957_s9] sm:$0xff]  ;;  %v312_v18 = vld [vmem:[%s957_s9 + $0x8] sm:$0xff]  ;;  %646 = vmatpush3.bf16.msra.mxu0 %v645_v13  ;;  %v648_v19 = vpack.c.bf16 %v217_v15, %v216_v14  ;;  %vm131_vm2 = vcmask 261120   ;;  %v476_v62 = vstv %s960_s12  ;;  %vm485_vm3 = vcmask 7168  }
   0xa   :  { %647 = vmatprep.subr.bf16.mxu0 %v721_v2  ;;  %v218_v20 = vld [vmem:[%s954_s6 + $0x20] sm:$0xff]  ;;  %v219_v21 = vld [vmem:[%s954_s6 + $0x28] sm:$0xff]  ;;  %v669_v23 = vpack.c.bf16 %v312_v18, %v311_v17  ;;  %v220_v27 = vld [vmem:[%s954_s6 + $0x30] sm:$0xff]  ;;  %s724_s12 = smov [#allocation3]  }
   0xb   :  { %v49_v22 = vld [vmem:[%s948_s0] sm:$0xff]  ;;  %v310_v25 = vld [vmem:[%s956_s8 + $0x8] sm:$0xff]  ;;  %v651_v26 = vpack.c.bf16 %v219_v21, %v218_v20  ;;  %v221_v28 = vld [vmem:[%s954_s6 + $0x38] sm:$0xff]  ;;  %s507_s15 = sshll.u32 %s724_s12, 4  ;;  %s508_s15 = int_to_ptr.vmem [resolvable:$true] %s507_s15 }
   0xc   :  { %643 = vmatpush3.bf16.msra.mxu1 %v642_v16  ;;  %v309_v24 = vld [vmem:[%s956_s8] sm:$0xff]  ;;  %v654_v31 = vpack.c.bf16 %v221_v28, %v220_v27  ;;  %v223_v33 = vld [vmem:[%s954_s6 + $0x48] sm:$0xff]  ;;  %v224_v35 = vld [vmem:[%s954_s6 + $0x50] sm:$0xff]  ;;  %s685_s8 = scalar_lea.vmem %s508_s15, 128  ;;  %p690_p1 = scmp.lt.s32.totalorder %s508_s15, %s508_s15 }
   0xd   :  { %668 = vmatprep.subr.bf16.mxu1 %v721_v2  ;;  %649 = vmatpush3.bf16.msra.mxu0 %v648_v19  ;;  %v308_v29 = vld [vmem:[%s950_s2] sm:$0xff]  ;;  %v672_v30 = vpack.c.bf16 %v310_v25, %v309_v24  ;;  %v225_v36 = vld [vmem:[%s954_s6 + $0x58] sm:$0xff]  ;;  %v227_v39 = vld [vmem:[%s954_s6 + $0x68] sm:$0xff]  ;;  %p686_p0 = scmp.ne.s32.totalorder %s508_s15, %s685_s8  ;;  %p691_p2 = scmp.lt.s32.totalorder %s685_s8, %s685_s8 }
   0xe   :  { %650 = vmatprep.subr.bf16.mxu0 %v721_v2  ;;  %v222_v32 = vld [vmem:[%s954_s6 + $0x40] sm:$0xff]  ;;  %v660_v37 = vpack.c.bf16 %v225_v36, %v224_v35  ;;  %v228_v41 = vld [vmem:[%s954_s6 + $0x70] sm:$0xff]  ;;  %v229_v42 = vld [vmem:[%s954_s6 + $0x78] sm:$0xff] }
   0xf   :  { %584 = vmatmul.mubr.msk.f32.vlgmr.msra.gmra.mrb[2].mxu1 %vm131_vm2, %v49_v22  ;;  %v657_v34 = vpack.c.bf16 %v223_v33, %v222_v32  ;;  %v226_v38 = vld [vmem:[%s954_s6 + $0x60] sm:$0xff]  ;;  %v666_v43 = vpack.c.bf16 %v229_v42, %v228_v41  ;;  %p692_p3 = por %p691_p2, %p690_p1 }
  0x10   :  { %670 = vmatpush3.bf16.msra.mxu1 %v669_v23  ;;  %625 = vmatprep.mubr.msk.f32.mxu1 %vm722_vm0, %v723_v4  ;;  %v663_v40 = vpack.c.bf16 %v227_v39, %v226_v38  ;;  %v530_v47 = vld [vmem:[%s953_s5] ss:$0 sm:$0xff] }
  0x11   :  { %671 = vmatprep.subr.bf16.mxu1 %v721_v2  ;;  %652 = vmatpush3.bf16.msra.mxu0 %v651_v26  ;;  %v534_v55 = vld [vmem:[%s958_s10] ss:$0 sm:$0xff]  ;;  %p693_p4 = pnand %p692_p3, %p686_p0 }
  0x12   :  { %653 = vmatprep.subr.bf16.mxu0 %v721_v2  ;;  %v535_v59 = vld [vmem:[%s959_s11] ss:$0 sm:$0xff] }
  0x13   :  { %626 = vmatmul.mubr.msk.f32.vlgmr.msra.gmra.mrb[4].mxu1 %vm57_vm1, %v308_v29 }
  0x14   :  { %673 = vmatpush3.bf16.msra.mxu1 %v672_v30  ;;  %632 = vmatprep.mubr.msk.f32.mxu1 %vm722_vm0, %v723_v4 }
  0x15   :  { %655 = vmatpush3.bf16.msra.mxu0 %v654_v31 }
  0x16   :  { %656 = vmatprep.subr.bf16.mxu0 %v721_v2 }
  0x17   :  { %633 = vmatmul.mubr.msk.f32.vlgmr.msra.gmra.mrb[6].mxu1 %vm57_vm1, %v50_v7  ;;  %v531_v7 = vld [vmem:[%s955_s7] ss:$0 sm:$0xff] }
  0x19   :  { %658 = vmatpush3.bf16.msra.mxu0 %v657_v34 }
  0x1a   :  { %659 = vmatprep.subr.bf16.mxu0 %v721_v2 }
  0x1d   :  { %661 = vmatpush3.bf16.msra.mxu0 %v660_v37 }
  0x1e   :  { %662 = vmatprep.subr.bf16.mxu0 %v721_v2 }
  0x21   :  { %664 = vmatpush3.bf16.msra.mxu0 %v663_v40 }
  0x22   :  { %665 = vmatprep.subr.bf16.mxu0 %v721_v2 }
  0x25   :  { %667 = vmatpush3.bf16.msra.mxu0 %v666_v43 }
  0xda   :  { %v127_v44 = vpop.f32.mrb[0].mxu1 }
  0xdb   :  { %v574_v45 = vpop.f32.mrb[1].mxu1 }
  0xe2   :  { %v201_v46 = vpop.f32.mrb[2].mxu1 }
  0xe3   :  { %v202_v48 = vadd.f32 %v201_v46, %v127_v44  ;;  %v585_v49 = vpop.f32.mrb[3].mxu1 }
  0xe5   :  { %v212_v50 = vadd.f32 %v530_v47, %v202_v48 }
  0xe6   :  { %v382_v51 = vpop.f32.mrb[4].mxu1 }
  0xe7   :  { %v213_v52 = vmax.f32 %v212_v50, 0.0  ;;  %v627_v53 = vpop.f32.mrb[5].mxu1 }
  0xe9   :  { %619 = vmatmul.mubr.f32.vlgmr.msra.gmra.mrb[0].mxu0 %v213_v52 }
  0xea   :  { %v452_v54 = vpop.f32.mrb[6].mxu1 }
  0xeb   :  { %v453_v56 = vadd.f32 %v452_v54, %v382_v51  ;;  %v634_v57 = vpop.f32.mrb[7].mxu1 }
  0xed   :  { %v463_v58 = vadd.f32 %v534_v55, %v453_v56 }
  0xef   :  { %v464_v60 = vmax.f32 %v463_v58, 0.0 }
  0xf1   :  { %v472_v61 = vmul.f32 %v535_v59, %v464_v60 }
  0xf3   :  { %473 = vadd.xlane.f32.xlu0 %v472_v61 }
 0x180   :  { %v474_v63 = vpop.xlane.xlu0 %473 }
 0x181   :  { %v477_v0 = vadd.f32 %v476_v62, %v474_v63 }
 0x183   :  { %v536_v1 = vmul.f32 -1.442695, %v477_v0 }
 0x185   :  { %681 = vpow2.f32 %v536_v1 }
 0x18f   :  { %v682_v2 = vpop.eup %681 }
 0x190   :  { %v481_v3 = vadd.f32 1.0, %v682_v2 }
 0x192   :  { %683 = vrcp.f32 %v481_v3 }
 0x19c   :  { %v684_v4 = vpop.eup %683 }
 0x19d   :  { %v484_v5 = vsub.f32 1.0, %v684_v4 }
 0x19f   :  { %v486_v6 = vsel %vm485_vm3, %v484_v5, 0.0 }
 0x1a0   :  { %487 = vadd.xlane.f32.xlu0 %v486_v6 }
 0x1bc   :  { %v303_v8 = vpop.f32.mrb[0].mxu0 }
 0x1bd   :  { %v304_v9 = vadd.f32 %v531_v7, %v303_v8  ;;  %v620_v10 = vpop.f32.mrb[1].mxu0 }
 0x1bf   :  { %307 = vst [vmem:[#allocation3] sm:$0xff] %v304_v9 }
 0x1c0   :  { %696 = shalt.err (!%p693_p4)
}
 0x1c1   :  { %s697_s3 = scalar_lea.hbm %s961_s13, 128 }
 0x1c2   :  { %p698_p5 = scmp.ne.s32.totalorder %s961_s13, %s697_s3  ;;  %p701_p6 = scmp.lt.u32.totalorder %s697_s3, %s961_s13 }
 0x1c4   :  { %p703_p7 = pnand %p701_p6, %p698_p5 }
 0x1c6   :  { %706 = shalt.err (!%p703_p7)
}
 0x1c7   :  { %510 = dma.vmem_to_hbm [thread:$0]  %s508_s15, 128, %s961_s13, [#allocation4]  }
 0x1c8   :  { %s707_s9 = scalar_lea.hbm %s962_s14, 16 }
 0x1c9   :  { %p708_p8 = scmp.ne.s32.totalorder %s962_s14, %s707_s9  ;;  %p711_p9 = scmp.lt.u32.totalorder %s707_s9, %s962_s14 }
 0x1cb   :  { %p713_p10 = pnand %p711_p9, %p708_p8 }
 0x22d   :  { %v488_v11 = vpop.xlane.xlu0 %487 }
 0x22e   :  { %v489_v12 = vrot.slane %v488_v11, 4 }
 0x230   :  { %v490_v13 = vadd.f32 %v489_v12, %v488_v11 }
 0x232   :  { %v491_v14 = vrot.slane %v490_v13, 2 }
 0x234   :  { %v492_v15 = vadd.f32 %v491_v14, %v490_v13 }
 0x236   :  { %v493_v16 = vrot.slane %v492_v15, 1 }
 0x238   :  { %v494_v17 = vadd.f32 %v493_v16, %v492_v15 }
 0x23a   :  { %674 = vpush %v494_v17 }
 0x26b   :  { %s675_s21 = spop %674 }
 0x26c   :  { %s498_s22 = smul.f32 0.125, %s675_s21 }
 0x26e   :  { %500 = sst [smem:[#allocation6]] %s498_s22 }
 0x26f   :  { %716 = shalt.err (!%p713_p10)
}
 0x270   :  { %s725_s28 = smov [#allocation6]  }
 0x271   :  { %518 = dma.smem_to_hbm %s725_s28, 16, %s962_s14, [#allocation5]  }
 0x272   :  { %717 = dma.done.wait [#allocation4], 128  }
 0x273   :  { %718 = vsyncadd [#allocation4], 4294967168 }
 0x274   :  { %719 = dma.done.wait [#allocation5], 16  }
 0x275   :  { %720 = vsyncadd [#allocation5], 4294967280 }
 0x276   :  { %525 = sfence }
 0x277   :  { %526 = vsyncpa [#allocation4], 1 }
 0x278   :  { %527 = vsyncpa [#allocation5], 1 }

</bundles_post_ra>
